<compile_context>
chip_gen: v6e
topology: v6e:2x2x1
jax: 0.10.0
libtpu: 0.0.40
codegen_flags: <defaults>
</compile_context>

<pallas_src>
import jax
import jax.numpy as jnp
from jax.experimental import pallas as pl
from jax.experimental.pallas import tpu as pltpu

EPS = 1e-5
LANE = 128


def _round_up(x, m):
    return (x + m - 1) // m * m


def _pad_last(a, target, value=0.0):
    pad = target - a.shape[-1]
    if pad == 0:
        return a
    widths = [(0, 0)] * (a.ndim - 1) + [(0, pad)]
    return jnp.pad(a, widths, constant_values=value)


def _pad2d(a, rows, cols):
    return jnp.pad(a, ((0, rows - a.shape[0]), (0, cols - a.shape[1])))


def _full_spec(shape):
    # Explicit per-array spec: fresh closure per call (no shared loop-variable
    # closure bug), index_map takes zero grid args because grid=().
    ndim = len(shape)
    return pl.BlockSpec(shape, lambda *_: (0,) * ndim)


def _bn_relu_fused(h, gamma, beta):
    """BatchNorm1d (training-mode batch stats, biased var) + ReLU.

    Fused to a single per-feature scale/shift:
        scale = gamma * rsqrt(var + eps);  shift = beta - mean * scale
        out   = max(h * scale + shift, 0)
    Stats use one reduction pass: var = E[h^2] - E[h]^2 (clamped at 0).
    """
    mean = jnp.mean(h, axis=0, keepdims=True)
    mean_sq = jnp.mean(h * h, axis=0, keepdims=True)
    var = jnp.maximum(mean_sq - mean * mean, 0.0)   # guard f32 cancellation
    scale = gamma * jax.lax.rsqrt(var + EPS)        # rsqrt rides the EUP slot
    shift = beta - mean * scale
    return jnp.maximum(h * scale + shift, 0.0)


def context_encoder_kernel(
    x_ref,
    w1_ref, b1_ref, g1_ref, bt1_ref,
    w2_ref, b2_ref, g2_ref, bt2_ref,
    w3_ref, b3_ref,
    o_ref,
):
    # fc1 (bf16 MXU operands, f32 accumulate) + fused BN + ReLU (f32 VPU)
    x = x_ref[...].astype(jnp.bfloat16)
    h = jnp.dot(x, w1_ref[...], preferred_element_type=jnp.float32) + b1_ref[...]
    h = _bn_relu_fused(h, g1_ref[...], bt1_ref[...])

    # fc2 + fused BN + ReLU
    h = jnp.dot(h.astype(jnp.bfloat16), w2_ref[...],
                preferred_element_type=jnp.float32) + b2_ref[...]
    h = _bn_relu_fused(h, g2_ref[...], bt2_ref[...])

    # fc3 -> lane-dense (multiple-of-128 wide) output store
    o_ref[...] = jnp.dot(h.astype(jnp.bfloat16), w3_ref[...],
                         preferred_element_type=jnp.float32) + b3_ref[...]


def context_encoder(x, params):
    """x: [N, in_ch] float32.  params: dict of weights (see init_params)."""
    n, in_ch = x.shape
    hid_ch = params["w1"].shape[1]
    out_ch = params["w3"].shape[1]

    in_p = _round_up(in_ch, LANE)
    hid_p = _round_up(hid_ch, LANE)
    out_p = _round_up(out_ch, LANE)

    # Lane-pad every feature dimension to a multiple of 128.  Padded BN
    # columns stay exactly zero (gamma pad = 1, beta pad = 0, inputs 0), so
    # the real features are numerically unchanged.
    x_p = _pad_last(x, in_p)
    w1 = _pad2d(params["w1"], in_p, hid_p).astype(jnp.bfloat16)
    w2 = _pad2d(params["w2"], hid_p, hid_p).astype(jnp.bfloat16)
    w3 = _pad2d(params["w3"], hid_p, out_p).astype(jnp.bfloat16)
    b1 = _pad_last(params["b1"], hid_p)
    b2 = _pad_last(params["b2"], hid_p)
    b3 = _pad_last(params["b3"], out_p)
    g1 = _pad_last(params["g1"], hid_p, 1.0)
    g2 = _pad_last(params["g2"], hid_p, 1.0)
    bt1 = _pad_last(params["bt1"], hid_p)
    bt2 = _pad_last(params["bt2"], hid_p)

    args = (x_p, w1, b1, g1, bt1, w2, b2, g2, bt2, w3, b3)

    out_padded = pl.pallas_call(
        context_encoder_kernel,
        out_shape=jax.ShapeDtypeStruct((n, out_p), jnp.float32),
        grid=(),
        in_specs=[_full_spec(a.shape) for a in args],
        out_specs=_full_spec((n, out_p)),
        compiler_params=pltpu.CompilerParams(
            vmem_limit_bytes=32 * 1024 * 1024,
        ),
    )(*args)

    return out_padded[:, :out_ch]


def init_params(key, in_ch, out_ch, hidden_ch):
    """Deterministic synthetic init (shapes match the PyTorch module)."""
    ks = jax.random.split(key, 10)

    def lin(kw, kb, fan_in, fan_out):
        # kaiming-uniform-ish bound; stored as [in, out] (transposed vs torch)
        bound = (6.0 / fan_in) ** 0.5
        w = jax.random.uniform(kw, (fan_in, fan_out), jnp.float32, -bound, bound)
        b = jax.random.uniform(kb, (1, fan_out), jnp.float32, -bound, bound)
        return w, b

    w1, b1 = lin(ks[0], ks[1], in_ch, hidden_ch)
    w2, b2 = lin(ks[2], ks[3], hidden_ch, hidden_ch)
    w3, b3 = lin(ks[4], ks[5], hidden_ch, out_ch)

    # Non-trivial BN affine so the test actually exercises gamma/beta handling.
    g1 = 1.0 + 0.1 * jax.random.normal(ks[6], (1, hidden_ch), jnp.float32)
    bt1 = 0.1 * jax.random.normal(ks[7], (1, hidden_ch), jnp.float32)
    g2 = 1.0 + 0.1 * jax.random.normal(ks[8], (1, hidden_ch), jnp.float32)
    bt2 = 0.1 * jax.random.normal(ks[9], (1, hidden_ch), jnp.float32)

    return {
        "w1": w1, "b1": b1, "g1": g1, "bt1": bt1,
        "w2": w2, "b2": b2, "g2": g2, "bt2": bt2,
        "w3": w3, "b3": b3,
    }


def reference(x, p):
    """Pure-JAX reference with the same precision policy as the kernel
    (bf16 matmul operands, f32 accumulation, f32 BatchNorm/ReLU with
    gamma/beta and the classic two-pass biased variance)."""
    def mm(a, w):
        return jnp.dot(a.astype(jnp.bfloat16), w.astype(jnp.bfloat16),
                       preferred_element_type=jnp.float32)

    def bn_relu(h, g, b):
        m = jnp.mean(h, axis=0, keepdims=True)
        v = jnp.mean((h - m) ** 2, axis=0, keepdims=True)   # biased variance
        return jnp.maximum(g * (h - m) * jax.lax.rsqrt(v + EPS) + b, 0.0)

    h = bn_relu(mm(x, p["w1"]) + p["b1"], p["g1"], p["bt1"])
    h = bn_relu(mm(h, p["w2"]) + p["b2"], p["g2"], p["bt2"])
    return mm(h, p["w3"]) + p["b3"]


if __name__ == "__main__":
    N, IN_CH, HIDDEN_CH, OUT_CH = 8, 16, 32, 16

    key = jax.random.PRNGKey(0)
    kx, kp = jax.random.split(key)
    x = jax.random.normal(kx, (N, IN_CH), jnp.float32)
    params = init_params(kp, IN_CH, OUT_CH, HIDDEN_CH)

    out = context_encoder(x, params)
    out = jax.block_until_ready(out)

    ref = reference(x, params)
    assert out.shape == (N, OUT_CH)
    assert jnp.allclose(out, ref, atol=2e-2, rtol=2e-2), (
        float(jnp.max(jnp.abs(out - ref)))
    )

    print("KERNEL_OK")
</pallas_src>

<mosaic_0001>
module attributes {stable_mosaic.version = 11 : i64} {
  func.func @context_encoder_kernel(%arg0: memref<8x128xf32, #tpu.memory_space<vmem>>, %arg1: memref<128x128xbf16, #tpu.memory_space<vmem>>, %arg2: memref<1x128xf32, #tpu.memory_space<vmem>>, %arg3: memref<1x128xf32, #tpu.memory_space<vmem>>, %arg4: memref<1x128xf32, #tpu.memory_space<vmem>>, %arg5: memref<128x128xbf16, #tpu.memory_space<vmem>>, %arg6: memref<1x128xf32, #tpu.memory_space<vmem>>, %arg7: memref<1x128xf32, #tpu.memory_space<vmem>>, %arg8: memref<1x128xf32, #tpu.memory_space<vmem>>, %arg9: memref<128x128xbf16, #tpu.memory_space<vmem>>, %arg10: memref<1x128xf32, #tpu.memory_space<vmem>>, %arg11: memref<8x128xf32, #tpu.memory_space<vmem>>) attributes {dimension_semantics = [], scalar_prefetch = 0 : i64, scratch_operands = 0 : i64, tpu.core_type = #tpu.core_type<tc>} {
    %c0 = arith.constant 0 : index
    %c0_0 = arith.constant 0 : index
    %0 = vector.load %arg0[%c0, %c0_0] : memref<8x128xf32, #tpu.memory_space<vmem>>, vector<8x128xf32>
    %1 = arith.truncf %0 : vector<8x128xf32> to vector<8x128xbf16>
    %c0_1 = arith.constant 0 : index
    %c0_2 = arith.constant 0 : index
    %2 = vector.load %arg1[%c0_1, %c0_2] : memref<128x128xbf16, #tpu.memory_space<vmem>>, vector<128x128xbf16>
    %cst = arith.constant dense<0.000000e+00> : vector<8x128xf32>
    %3 = tpu.matmul %1, %2, %cst {dimension_numbers = #tpu.dot_dimension_numbers<[1], [0], [0], [1], [0, 0, 1, 1], [], []>} : vector<8x128xbf16>, vector<128x128xbf16>, vector<8x128xf32> -> vector<8x128xf32>
    %c0_3 = arith.constant 0 : index
    %c0_4 = arith.constant 0 : index
    %4 = vector.load %arg2[%c0_3, %c0_4] : memref<1x128xf32, #tpu.memory_space<vmem>>, vector<1x128xf32>
    %5 = vector.broadcast %4 : vector<1x128xf32> to vector<8x128xf32>
    %6 = arith.addf %3, %5 : vector<8x128xf32>
    %c0_5 = arith.constant 0 : index
    %c0_6 = arith.constant 0 : index
    %7 = vector.load %arg3[%c0_5, %c0_6] : memref<1x128xf32, #tpu.memory_space<vmem>>, vector<1x128xf32>
    %c0_7 = arith.constant 0 : index
    %c0_8 = arith.constant 0 : index
    %8 = vector.load %arg4[%c0_7, %c0_8] : memref<1x128xf32, #tpu.memory_space<vmem>>, vector<1x128xf32>
    %cst_9 = arith.constant dense<0.000000e+00> : vector<128xf32>
    %9 = vector.multi_reduction <add>, %6, %cst_9 [0] : vector<8x128xf32> to vector<128xf32>
    %10 = vector.shape_cast %9 : vector<128xf32> to vector<1x128xf32>
    %cst_10 = arith.constant 8.000000e+00 : f32
    %11 = vector.broadcast %cst_10 : f32 to vector<1x128xf32>
    %12 = arith.divf %10, %11 : vector<1x128xf32>
    %13 = arith.mulf %6, %6 : vector<8x128xf32>
    %cst_11 = arith.constant dense<0.000000e+00> : vector<128xf32>
    %14 = vector.multi_reduction <add>, %13, %cst_11 [0] : vector<8x128xf32> to vector<128xf32>
    %15 = vector.shape_cast %14 : vector<128xf32> to vector<1x128xf32>
    %cst_12 = arith.constant 8.000000e+00 : f32
    %16 = vector.broadcast %cst_12 : f32 to vector<1x128xf32>
    %17 = arith.divf %15, %16 : vector<1x128xf32>
    %18 = arith.mulf %12, %12 : vector<1x128xf32>
    %19 = arith.subf %17, %18 : vector<1x128xf32>
    %cst_13 = arith.constant 0.000000e+00 : f32
    %20 = vector.broadcast %cst_13 : f32 to vector<1x128xf32>
    %21 = arith.maximumf %19, %20 : vector<1x128xf32>
    %cst_14 = arith.constant 9.99999974E-6 : f32
    %22 = vector.broadcast %cst_14 : f32 to vector<1x128xf32>
    %23 = arith.addf %21, %22 : vector<1x128xf32>
    %24 = math.rsqrt %23 : vector<1x128xf32>
    %25 = arith.mulf %7, %24 : vector<1x128xf32>
    %26 = arith.mulf %12, %25 : vector<1x128xf32>
    %27 = arith.subf %8, %26 : vector<1x128xf32>
    %28 = vector.broadcast %25 : vector<1x128xf32> to vector<8x128xf32>
    %29 = arith.mulf %6, %28 : vector<8x128xf32>
    %30 = vector.broadcast %27 : vector<1x128xf32> to vector<8x128xf32>
    %31 = arith.addf %29, %30 : vector<8x128xf32>
    %cst_15 = arith.constant 0.000000e+00 : f32
    %32 = vector.broadcast %cst_15 : f32 to vector<8x128xf32>
    %33 = arith.maximumf %31, %32 : vector<8x128xf32>
    %34 = arith.truncf %33 : vector<8x128xf32> to vector<8x128xbf16>
    %c0_16 = arith.constant 0 : index
    %c0_17 = arith.constant 0 : index
    %35 = vector.load %arg5[%c0_16, %c0_17] : memref<128x128xbf16, #tpu.memory_space<vmem>>, vector<128x128xbf16>
    %cst_18 = arith.constant dense<0.000000e+00> : vector<8x128xf32>
    %36 = tpu.matmul %34, %35, %cst_18 {dimension_numbers = #tpu.dot_dimension_numbers<[1], [0], [0], [1], [0, 0, 1, 1], [], []>} : vector<8x128xbf16>, vector<128x128xbf16>, vector<8x128xf32> -> vector<8x128xf32>
    %c0_19 = arith.constant 0 : index
    %c0_20 = arith.constant 0 : index
    %37 = vector.load %arg6[%c0_19, %c0_20] : memref<1x128xf32, #tpu.memory_space<vmem>>, vector<1x128xf32>
    %38 = vector.broadcast %37 : vector<1x128xf32> to vector<8x128xf32>
    %39 = arith.addf %36, %38 : vector<8x128xf32>
    %c0_21 = arith.constant 0 : index
    %c0_22 = arith.constant 0 : index
    %40 = vector.load %arg7[%c0_21, %c0_22] : memref<1x128xf32, #tpu.memory_space<vmem>>, vector<1x128xf32>
    %c0_23 = arith.constant 0 : index
    %c0_24 = arith.constant 0 : index
    %41 = vector.load %arg8[%c0_23, %c0_24] : memref<1x128xf32, #tpu.memory_space<vmem>>, vector<1x128xf32>
    %cst_25 = arith.constant dense<0.000000e+00> : vector<128xf32>
    %42 = vector.multi_reduction <add>, %39, %cst_25 [0] : vector<8x128xf32> to vector<128xf32>
    %43 = vector.shape_cast %42 : vector<128xf32> to vector<1x128xf32>
    %cst_26 = arith.constant 8.000000e+00 : f32
    %44 = vector.broadcast %cst_26 : f32 to vector<1x128xf32>
    %45 = arith.divf %43, %44 : vector<1x128xf32>
    %46 = arith.mulf %39, %39 : vector<8x128xf32>
    %cst_27 = arith.constant dense<0.000000e+00> : vector<128xf32>
    %47 = vector.multi_reduction <add>, %46, %cst_27 [0] : vector<8x128xf32> to vector<128xf32>
    %48 = vector.shape_cast %47 : vector<128xf32> to vector<1x128xf32>
    %cst_28 = arith.constant 8.000000e+00 : f32
    %49 = vector.broadcast %cst_28 : f32 to vector<1x128xf32>
    %50 = arith.divf %48, %49 : vector<1x128xf32>
    %51 = arith.mulf %45, %45 : vector<1x128xf32>
    %52 = arith.subf %50, %51 : vector<1x128xf32>
    %cst_29 = arith.constant 0.000000e+00 : f32
    %53 = vector.broadcast %cst_29 : f32 to vector<1x128xf32>
    %54 = arith.maximumf %52, %53 : vector<1x128xf32>
    %cst_30 = arith.constant 9.99999974E-6 : f32
    %55 = vector.broadcast %cst_30 : f32 to vector<1x128xf32>
    %56 = arith.addf %54, %55 : vector<1x128xf32>
    %57 = math.rsqrt %56 : vector<1x128xf32>
    %58 = arith.mulf %40, %57 : vector<1x128xf32>
    %59 = arith.mulf %45, %58 : vector<1x128xf32>
    %60 = arith.subf %41, %59 : vector<1x128xf32>
    %61 = vector.broadcast %58 : vector<1x128xf32> to vector<8x128xf32>
    %62 = arith.mulf %39, %61 : vector<8x128xf32>
    %63 = vector.broadcast %60 : vector<1x128xf32> to vector<8x128xf32>
    %64 = arith.addf %62, %63 : vector<8x128xf32>
    %cst_31 = arith.constant 0.000000e+00 : f32
    %65 = vector.broadcast %cst_31 : f32 to vector<8x128xf32>
    %66 = arith.maximumf %64, %65 : vector<8x128xf32>
    %67 = arith.truncf %66 : vector<8x128xf32> to vector<8x128xbf16>
    %c0_32 = arith.constant 0 : index
    %c0_33 = arith.constant 0 : index
    %68 = vector.load %arg9[%c0_32, %c0_33] : memref<128x128xbf16, #tpu.memory_space<vmem>>, vector<128x128xbf16>
    %cst_34 = arith.constant dense<0.000000e+00> : vector<8x128xf32>
    %69 = tpu.matmul %67, %68, %cst_34 {dimension_numbers = #tpu.dot_dimension_numbers<[1], [0], [0], [1], [0, 0, 1, 1], [], []>} : vector<8x128xbf16>, vector<128x128xbf16>, vector<8x128xf32> -> vector<8x128xf32>
    %c0_35 = arith.constant 0 : index
    %c0_36 = arith.constant 0 : index
    %70 = vector.load %arg10[%c0_35, %c0_36] : memref<1x128xf32, #tpu.memory_space<vmem>>, vector<1x128xf32>
    %71 = vector.broadcast %70 : vector<1x128xf32> to vector<8x128xf32>
    %72 = arith.addf %69, %71 : vector<8x128xf32>
    %c0_37 = arith.constant 0 : index
    %c0_38 = arith.constant 0 : index
    %73 = vector.load %arg11[%c0_37, %c0_38] : memref<8x128xf32, #tpu.memory_space<vmem>>, vector<8x128xf32>
    tpu.vector_store %arg11[%c0_37, %c0_38], %72 {strides = array<i32>} : memref<8x128xf32, #tpu.memory_space<vmem>>, vector<8x128xf32>,
    return
  }
}

</mosaic_0001>

<bundles_post_ra>
// kernel: tpu_custom_call.1
= control target key start
LH: loop header
LB: loop body
LE: loop exit
PB: predicated region body
PF: predicated region fallthrough
CT: control target
= control target key end

     0   :  { %16 = vsyncpa [#allocation3], 0  ;;  %s938_s0 = inlined_call_operand.hbm [shape: f32[8,128], index: 0, kind: input, shape index: {}]   ;;  %s939_s1 = inlined_call_operand.hbm [shape: bf16[128,128], index: 1, kind: input, shape index: {}]   ;;  %s940_s2 = inlined_call_operand.vmem [shape: f32[1,128], index: 2, kind: input, shape index: {}]   ;;  %s941_s3 = inlined_call_operand.vmem [shape: f32[1,128], index: 3, kind: input, shape index: {}]   ;;  %s942_s4 = inlined_call_operand.vmem [shape: f32[1,128], index: 4, kind: input, shape index: {}]   ;;  %s943_s5 = inlined_call_operand.hbm [shape: bf16[128,128], index: 5, kind: input, shape index: {}]   ;;  %s944_s6 = inlined_call_operand.vmem [shape: f32[1,128], index: 6, kind: input, shape index: {}]   ;;  %s945_s7 = inlined_call_operand.vmem [shape: f32[1,128], index: 7, kind: input, shape index: {}]   ;;  %s946_s8 = inlined_call_operand.vmem [shape: f32[1,128], index: 8, kind: input, shape index: {}]   ;;  %s947_s9 = inlined_call_operand.hbm [shape: bf16[128,128], index: 9, kind: input, shape index: {}]   ;;  %s948_s10 = inlined_call_operand.vmem [shape: f32[1,128], index: 10, kind: input, shape index: {}]   ;;  %s949_s11 = inlined_call_operand.hbm [shape: f32[8,128], index: 11, kind: output, shape index: {}]  }
   0x1   :  { %17 = vsyncpa [#allocation6], 0 }
   0x2   :  { %18 = vsyncpa [#allocation9], 0 }
   0x3   :  { %19 = vsyncpa [#allocation4], 0  ;;  %s788_s17 = smov [#allocation5]  }
   0x4   :  { %s35_s18 = sshll.u32 %s788_s17, 4  ;;  %s36_s18 = int_to_ptr.vmem [resolvable:$true] %s35_s18 }
   0x5   :  { %s688_s19 = scalar_lea.vmem %s36_s18, 1024  ;;  %p693_p1 = scmp.lt.s32.totalorder %s36_s18, %s36_s18 }
   0x6   :  { %p689_p0 = scmp.ne.s32.totalorder %s36_s18, %s688_s19  ;;  %p694_p2 = scmp.lt.s32.totalorder %s688_s19, %s688_s19 }
   0x8   :  { %p695_p3 = por %p694_p2, %p693_p1 }
   0xa   :  { %p696_p4 = pnand %p695_p3, %p689_p0 }
   0xc   :  { %699 = shalt.err (!%p696_p4)
}
   0xd   :  { %s789_s20 = smov 64   ;;  %s790_s21 = smov 4  }
   0xe   :  { %41 = dma.hbm_to_vmem [thread:$0]  %s939_s1, 1024, %s36_s18, [#allocation6], %s789_s20, %s789_s20, %s790_s21  }
   0xf   :  { %s791_s24 = smov [#allocation2]   ;;  %s792_s26 = smov [#allocation7]  }
  0x10   :  { %s26_s25 = sshll.u32 %s791_s24, 4  ;;  %s53_s27 = sshll.u32 %s792_s26, 4  ;;  %s27_s25 = int_to_ptr.vmem [resolvable:$true] %s26_s25  ;;  %s54_s27 = int_to_ptr.vmem [resolvable:$true] %s53_s27 }
  0x11   :  { %s708_s28 = scalar_lea.vmem %s27_s25, 128  ;;  %p713_p6 = scmp.lt.s32.totalorder %s27_s25, %s27_s25 }
  0x12   :  { %p709_p5 = scmp.ne.s32.totalorder %s27_s25, %s708_s28  ;;  %p714_p7 = scmp.lt.s32.totalorder %s708_s28, %s708_s28 }
  0x14   :  { %p715_p8 = por %p714_p7, %p713_p6 }
  0x16   :  { %p716_p9 = pnand %p715_p8, %p709_p5 }
  0x18   :  { %719 = shalt.err (!%p716_p9)
}
  0x19   :  { %29 = dma.hbm_to_vmem [thread:$0]  %s938_s0, 128, %s27_s25, [#allocation3]  }
  0x1a   :  { %s728_s12 = scalar_lea.vmem %s54_s27, 1024  ;;  %p733_p11 = scmp.lt.s32.totalorder %s54_s27, %s54_s27 }
  0x1b   :  { %p729_p10 = scmp.ne.s32.totalorder %s54_s27, %s728_s12  ;;  %p734_p12 = scmp.lt.s32.totalorder %s728_s12, %s728_s12 }
  0x1d   :  { %p735_p13 = por %p734_p12, %p733_p11 }
  0x1f   :  { %p736_p0 = pnand %p735_p13, %p729_p10 }
  0x21   :  { %739 = shalt.err (!%p736_p0)
}
  0x22   :  { %59 = dma.hbm_to_vmem [thread:$0]  %s943_s5, 1024, %s54_s27, [#allocation6], %s789_s20, %s789_s20, %s790_s21  }
  0x23   :  { %s793_s14 = smov [#allocation8]  }
  0x24   :  { %s71_s15 = sshll.u32 %s793_s14, 4  ;;  %s72_s15 = int_to_ptr.vmem [resolvable:$true] %s71_s15 }
  0x25   :  { %s748_s16 = scalar_lea.vmem %s72_s15, 1024  ;;  %p753_p2 = scmp.lt.s32.totalorder %s72_s15, %s72_s15 }
  0x26   :  { %p749_p1 = scmp.ne.s32.totalorder %s72_s15, %s748_s16  ;;  %p754_p3 = scmp.lt.s32.totalorder %s748_s16, %s748_s16 }
  0x28   :  { %p755_p4 = por %p754_p3, %p753_p2 }
  0x2a   :  { %p756_p5 = pnand %p755_p4, %p749_p1 }
  0x2c   :  { %759 = shalt.err (!%p756_p5)
}
  0x2d   :  { %77 = dma.hbm_to_vmem [thread:$0]  %s947_s9, 1024, %s72_s15, [#allocation9], %s789_s20, %s789_s20, %s790_s21  }
  0x2e   :  { %780 = dma.done.wait [#allocation3], 128  }
  0x2f   :  { %781 = vsyncadd [#allocation3], 4294967168 }
  0x30   :  { %782 = dma.done.wait [#allocation6], 2048  }
  0x31   :  { %783 = vsyncadd [#allocation6], 4294965248 }
  0x32   :  { %784 = dma.done.wait [#allocation9], 1024  }
  0x33   :  { %785 = vsyncadd [#allocation9], 4294966272  ;;  %v794_v0 = vmov 0.0   ;;  %vm795_vm0 = vmmov 0   ;;  %v652_v1 = vld [vmem:[#allocation5 + $0x38] sm:$0xff]   ;;  %v653_v2 = vld [vmem:[#allocation5 + $0x30] sm:$0xff]   ;;  %v233_v44 = vlaneseq }
  0x34   :  { %583 = vmatprep.subr.bf16.mxu0 %v794_v0  ;;  %599 = vmatprep.mubr.msk.bf16.mxu0 %vm795_vm0, %v794_v0  ;;  %v654_v3 = vld [vmem:[#allocation5 + $0x28] sm:$0xff]   ;;  %v655_v4 = vld [vmem:[#allocation5 + $0x20] sm:$0xff]   ;;  %v656_v5 = vld [vmem:[#allocation5 + $0x18] sm:$0xff]  }
  0x35   :  { %603 = vmatprep.subr.bf16.mxu1 %v794_v0  ;;  %619 = vmatprep.mubr.msk.bf16.mxu1 %vm795_vm0, %v794_v0  ;;  %v657_v6 = vld [vmem:[#allocation5 + $0x10] sm:$0xff]   ;;  %v658_v7 = vld [vmem:[#allocation5 + $0x8] sm:$0xff]   ;;  %v659_v8 = vld [vmem:[#allocation5] sm:$0xff]   ;;  %v234_v45 = vshrl.u32 %v233_v44, 7 }
  0x36   :  { %584 = vmatpush3.bf16.msra.mxu0 %v652_v1  ;;  %v93_v9 = vld [vmem:[#allocation2] sm:$0xff]  ;;  %v661_v12 = vld [vmem:[#allocation7 + $0x30] sm:$0xff]   ;;  %v662_v13 = vld [vmem:[#allocation7 + $0x28] sm:$0xff]  }
  0x37   :  { %585 = vmatprep.subr.bf16.mxu0 %v794_v0  ;;  %v94_v10 = vpack.c.bf16 %v93_v9, %v93_v9  ;;  %v660_v11 = vld [vmem:[#allocation7 + $0x38] sm:$0xff]   ;;  %v663_v14 = vld [vmem:[#allocation7 + $0x20] sm:$0xff]   ;;  %v665_v16 = vld [vmem:[#allocation7 + $0x10] sm:$0xff]   ;;  %v907_v47 = vsub.s32 0, %v234_v45 }
  0x38   :  { %604 = vmatpush3.bf16.msra.mxu1 %v660_v11  ;;  %v664_v15 = vld [vmem:[#allocation7 + $0x18] sm:$0xff]   ;;  %v666_v17 = vld [vmem:[#allocation7 + $0x8] sm:$0xff]   ;;  %v667_v18 = vld [vmem:[#allocation7] sm:$0xff]  }
  0x39   :  { %605 = vmatprep.subr.bf16.mxu1 %v794_v0  ;;  %v529_v19 = vld [vmem:[%s940_s2] ss:$0 sm:$0xff]  ;;  %v669_v60 = vld [vmem:[#allocation8 + $0x30] sm:$0xff]   ;;  %v670_v61 = vld [vmem:[#allocation8 + $0x28] sm:$0xff]  }
  0x3a   :  { %586 = vmatpush3.bf16.msra.mxu0 %v653_v2  ;;  %v206_v46 = vld [vmem:[%s941_s3] sm:$0x1]  ;;  %v671_v62 = vld [vmem:[#allocation8 + $0x20] sm:$0xff]   ;;  %v673_v1 = vld [vmem:[#allocation8 + $0x10] sm:$0xff]  }
  0x3b   :  { %587 = vmatprep.subr.bf16.mxu0 %v794_v0  ;;  %v207_v50 = vld [vmem:[%s942_s4] sm:$0x1]  ;;  %v674_v2 = vld [vmem:[#allocation8 + $0x8] sm:$0xff]  }
  0x3c   :  { %606 = vmatpush3.bf16.msra.mxu1 %v661_v12  ;;  %v668_v59 = vld [vmem:[#allocation8 + $0x38] sm:$0xff]  }
  0x3d   :  { %607 = vmatprep.subr.bf16.mxu1 %v794_v0  ;;  %v672_v63 = vld [vmem:[#allocation8 + $0x18] sm:$0xff]  }
  0x3e   :  { %588 = vmatpush3.bf16.msra.mxu0 %v654_v3  ;;  %v675_v3 = vld [vmem:[#allocation8] sm:$0xff]  }
  0x3f   :  { %589 = vmatprep.subr.bf16.mxu0 %v794_v0 }
  0x40   :  { %608 = vmatpush3.bf16.msra.mxu1 %v662_v13 }
  0x41   :  { %609 = vmatprep.subr.bf16.mxu1 %v794_v0 }
  0x42   :  { %590 = vmatpush3.bf16.msra.mxu0 %v655_v4  ;;  %v538_v4 = vld [vmem:[%s944_s6] ss:$0 sm:$0xff] }
  0x43   :  { %591 = vmatprep.subr.bf16.mxu0 %v794_v0 }
  0x44   :  { %610 = vmatpush3.bf16.msra.mxu1 %v663_v14 }
  0x45   :  { %611 = vmatprep.subr.bf16.mxu1 %v794_v0 }
  0x46   :  { %592 = vmatpush3.bf16.msra.mxu0 %v656_v5 }
  0x47   :  { %593 = vmatprep.subr.bf16.mxu0 %v794_v0 }
  0x48   :  { %612 = vmatpush3.bf16.msra.mxu1 %v664_v15 }
  0x49   :  { %613 = vmatprep.subr.bf16.mxu1 %v794_v0 }
  0x4a   :  { %594 = vmatpush3.bf16.msra.mxu0 %v657_v6 }
  0x4b   :  { %595 = vmatprep.subr.bf16.mxu0 %v794_v0 }
  0x4c   :  { %614 = vmatpush3.bf16.msra.mxu1 %v665_v16 }
  0x4d   :  { %615 = vmatprep.subr.bf16.mxu1 %v794_v0 }
  0x4e   :  { %596 = vmatpush3.bf16.msra.mxu0 %v658_v7 }
  0x4f   :  { %597 = vmatprep.subr.bf16.mxu0 %v794_v0 }
  0x50   :  { %616 = vmatpush3.bf16.msra.mxu1 %v666_v17 }
  0x51   :  { %617 = vmatprep.subr.bf16.mxu1 %v794_v0 }
  0x52   :  { %598 = vmatpush3.bf16.msra.mxu0 %v659_v8 }
  0x53   :  { %623 = vmatprep.subr.bf16.mxu0 %v794_v0 }
  0x54   :  { %618 = vmatpush3.bf16.msra.mxu1 %v667_v18 }
  0x55   :  { %600 = vmatmul.mubr.bf16.vlgmr.msra.gmra.mxu0 %v94_v10 }
  0x56   :  { %639 = vmatprep.mubr.msk.bf16.mxu0 %vm795_vm0, %v794_v0  ;;  %624 = vmatpush3.bf16.msra.mxu0 %v668_v59 }
  0x57   :  { %625 = vmatprep.subr.bf16.mxu0 %v794_v0 }
  0x5a   :  { %626 = vmatpush3.bf16.msra.mxu0 %v669_v60 }
  0x5b   :  { %627 = vmatprep.subr.bf16.mxu0 %v794_v0 }
  0x5e   :  { %628 = vmatpush3.bf16.msra.mxu0 %v670_v61 }
  0x5f   :  { %629 = vmatprep.subr.bf16.mxu0 %v794_v0 }
  0x62   :  { %630 = vmatpush3.bf16.msra.mxu0 %v671_v62 }
  0x63   :  { %631 = vmatprep.subr.bf16.mxu0 %v794_v0 }
  0x66   :  { %632 = vmatpush3.bf16.msra.mxu0 %v672_v63 }
  0x67   :  { %633 = vmatprep.subr.bf16.mxu0 %v794_v0 }
  0x6a   :  { %634 = vmatpush3.bf16.msra.mxu0 %v673_v1 }
  0x6b   :  { %635 = vmatprep.subr.bf16.mxu0 %v794_v0 }
  0x6e   :  { %636 = vmatpush3.bf16.msra.mxu0 %v674_v2 }
  0x6f   :  { %637 = vmatprep.subr.bf16.mxu0 %v794_v0 }
  0x72   :  { %638 = vmatpush3.bf16.msra.mxu0 %v675_v3 }
 0x115   :  { %v200_v20 = vpop.f32.mrf.mxu0 }
 0x116   :  { %v201_v21 = vadd.f32 %v529_v19, %v200_v20 }
 0x117   :  { %v601_v22 = vpop.f32.mrf.mxu0 }
 0x118   :  { %v208_v23 = vrot.slane %v201_v21, 4  ;;  %v216_v24 = vmul.f32 %v201_v21, %v201_v21 }
 0x119   :  { %v203_v25 = vpop.f32.mrf.mxu0 }
 0x11a   :  { %v209_v26 = vadd.f32 %v208_v23, %v201_v21  ;;  %v217_v27 = vrot.slane %v216_v24, 4 }
 0x11b   :  { %v602_v28 = vpop.f32.mrf.mxu0 }
 0x11c   :  { %v210_v29 = vrot.slane %v209_v26, 2  ;;  %v218_v30 = vadd.f32 %v217_v27, %v216_v24  ;;  %v359_v28 = vld [vmem:[%s945_s7] sm:$0x1]  ;;  %s796_s7 = smov [#allocation10]  }
 0x11d   :  { %s518_s26 = sshll.u32 %s796_s7, 4  ;;  %s519_s26 = int_to_ptr.vmem [resolvable:$true] %s518_s26 }
 0x11e   :  { %v211_v31 = vadd.f32 %v210_v29, %v209_v26  ;;  %v219_v32 = vrot.slane %v218_v30, 2  ;;  %p765_p7 = scmp.lt.s32.totalorder %s519_s26, %s519_s26 }
 0x120   :  { %v212_v33 = vrot.slane %v211_v31, 1  ;;  %v220_v34 = vadd.f32 %v219_v32, %v218_v30 }
 0x122   :  { %v213_v35 = vadd.f32 %v212_v33, %v211_v31  ;;  %v221_v36 = vrot.slane %v220_v34, 1  ;;  %v360_v31 = vld [vmem:[%s946_s8] sm:$0x1]  ;;  %s760_s8 = scalar_lea.vmem %s519_s26, 128 }
 0x123   :  { %p761_p6 = scmp.ne.s32.totalorder %s519_s26, %s760_s8  ;;  %p766_p8 = scmp.lt.s32.totalorder %s760_s8, %s760_s8 }
 0x124   :  { %v222_v37 = vadd.f32 %v221_v36, %v220_v34  ;;  %v215_v38 = vmul.f32 0.125, %v213_v35 }
 0x125   :  { %p767_p9 = por %p766_p8, %p765_p7 }
 0x126   :  { %v223_v39 = vmul.f32 0.125, %v222_v37  ;;  %v224_v40 = vmul.f32 %v215_v38, %v215_v38 }
 0x127   :  { %p768_p10 = pnand %p767_p9, %p761_p6 }
 0x128   :  { %v225_v41 = vsub.f32 %v223_v39, %v224_v40  ;;  %v547_v40 = vld [vmem:[%s948_s10] ss:$0 sm:$0xff] }
 0x12a   :  { %v226_v42 = vmax.f32 %v225_v41, 0.0 }
 0x12c   :  { %v227_v43 = vadd.f32 1e-05, %v226_v42 }
 0x12e   :  { %676 = vrsqrt.f32 %v227_v43 }
 0x13b   :  { %v677_v48 = vpop.eup %676 }
 0x13c   :  { %v229_v49 = vmul.f32 %v677_v48, %v206_v46 }
 0x13e   :  { %v230_v51 = vmul.f32 %v229_v49, %v215_v38  ;;  %v236_v52 = vrot.slane %v229_v49, %v907_v47 }
 0x140   :  { %v231_v53 = vsub.f32 %v207_v50, %v230_v51  ;;  %v238_v54 = vmul.f32 %v236_v52, %v201_v21 }
 0x142   :  { %v243_v55 = vrot.slane %v231_v53, %v907_v47 }
 0x144   :  { %v245_v56 = vadd.f32 %v243_v55, %v238_v54 }
 0x146   :  { %v246_v57 = vmax.f32 %v245_v56, 0.0 }
 0x148   :  { %v247_v58 = vpack.c.bf16 %v246_v57, %v246_v57 }
 0x14a   :  { %620 = vmatmul.mubr.bf16.vlgmr.msra.gmra.mxu1 %v247_v58 }
 0x20a   :  { %v353_v5 = vpop.f32.mrf.mxu1 }
 0x20b   :  { %v354_v6 = vadd.f32 %v538_v4, %v353_v5 }
 0x20c   :  { %v621_v7 = vpop.f32.mrf.mxu1 }
 0x20d   :  { %v361_v8 = vrot.slane %v354_v6, 4  ;;  %v368_v9 = vmul.f32 %v354_v6, %v354_v6 }
 0x20e   :  { %v356_v10 = vpop.f32.mrf.mxu1 }
 0x20f   :  { %v362_v11 = vadd.f32 %v361_v8, %v354_v6  ;;  %v369_v12 = vrot.slane %v368_v9, 4 }
 0x210   :  { %v622_v13 = vpop.f32.mrf.mxu1 }
 0x211   :  { %v363_v14 = vrot.slane %v362_v11, 2  ;;  %v370_v15 = vadd.f32 %v369_v12, %v368_v9 }
 0x213   :  { %v364_v16 = vadd.f32 %v363_v14, %v362_v11  ;;  %v371_v17 = vrot.slane %v370_v15, 2 }
 0x215   :  { %v365_v18 = vrot.slane %v364_v16, 1  ;;  %v372_v0 = vadd.f32 %v371_v17, %v370_v15 }
 0x217   :  { %v366_v19 = vadd.f32 %v365_v18, %v364_v16  ;;  %v373_v20 = vrot.slane %v372_v0, 1 }
 0x219   :  { %v367_v21 = vmul.f32 0.125, %v366_v19  ;;  %v374_v22 = vadd.f32 %v373_v20, %v372_v0 }
 0x21b   :  { %v375_v23 = vmul.f32 0.125, %v374_v22  ;;  %v376_v24 = vmul.f32 %v367_v21, %v367_v21 }
 0x21d   :  { %v377_v25 = vsub.f32 %v375_v23, %v376_v24 }
 0x21f   :  { %v378_v26 = vmax.f32 %v377_v25, 0.0 }
 0x221   :  { %v379_v27 = vadd.f32 1e-05, %v378_v26 }
 0x223   :  { %678 = vrsqrt.f32 %v379_v27 }
 0x230   :  { %v679_v29 = vpop.eup %678 }
 0x231   :  { %v381_v30 = vmul.f32 %v679_v29, %v359_v28 }
 0x233   :  { %v388_v32 = vrot.slane %v381_v30, %v907_v47  ;;  %v382_v33 = vmul.f32 %v381_v30, %v367_v21 }
 0x235   :  { %v383_v34 = vsub.f32 %v360_v31, %v382_v33  ;;  %v390_v35 = vmul.f32 %v388_v32, %v354_v6 }
 0x237   :  { %v395_v36 = vrot.slane %v383_v34, %v907_v47 }
 0x239   :  { %v397_v37 = vadd.f32 %v395_v36, %v390_v35 }
 0x23b   :  { %v398_v38 = vmax.f32 %v397_v37, 0.0 }
 0x23d   :  { %v399_v39 = vpack.c.bf16 %v398_v38, %v398_v38 }
 0x23f   :  { %640 = vmatmul.mubr.bf16.vlgmr.msra.gmra.mxu0 %v399_v39 }
 0x2ff   :  { %v505_v41 = vpop.f32.mrf.mxu0 }
 0x300   :  { %v506_v42 = vadd.f32 %v547_v40, %v505_v41 }
 0x301   :  { %v641_v43 = vpop.f32.mrf.mxu0 }
 0x302   :  { %511 = vst [vmem:[#allocation10] sm:$0xff] %v506_v42 }
 0x303   :  { %v508_v44 = vpop.f32.mrf.mxu0 }
 0x304   :  { %771 = shalt.err (!%p768_p10)
}
 0x305   :  { %521 = dma.vmem_to_hbm [thread:$0]  %s519_s26, 128, %s949_s11, [#allocation4]   ;;  %v642_v45 = vpop.f32.mrf.mxu0 }
 0x306   :  { %786 = dma.done.wait [#allocation4], 128  }
 0x307   :  { %787 = vsyncadd [#allocation4], 4294967168 }
 0x308   :  { %525 = vsyncpa [#allocation3], 1 }
 0x309   :  { %526 = vsyncpa [#allocation6], 1 }
 0x30a   :  { %527 = vsyncpa [#allocation9], 1 }
 0x30b   :  { %528 = vsyncpa [#allocation4], 1 }

</bundles_post_ra>
